<compile_context>
chip_gen: v7x
topology: tpu7x:2x2x1
jax: 0.10.0
libtpu: 0.0.40
codegen_flags: <defaults>
</compile_context>

<pallas_src>
import functools

import jax
import jax.numpy as jnp
from jax.experimental import pallas as pl
from jax.experimental.pallas import tpu as pltpu


def _round_up(n, m):
    return ((n + m - 1) // m) * m


def _vmem_capacity_bytes():
    """Physical VMEM of the attached chip; conservative fallback = 64 MiB (v7x)."""
    try:
        info = pltpu.get_tpu_info()
        cap = getattr(info, "vmem_capacity_bytes", None)
        if cap:
            return int(cap)
    except Exception:
        pass
    return 64 * 1024 * 1024


def _fused_mlp_kernel(x_ref, wg_ref, wu_ref, wd_ref, o_ref, acc_ref):
    """One (i_split, token-tile, intermediate-tile) step of the fused MLP."""
    k = pl.program_id(2)

    @pl.when(k == 0)
    def _init():
        acc_ref[...] = jnp.zeros_like(acc_ref)

    x = x_ref[...]                                    # bf16, cast once upstream
    gate = jnp.dot(x, wg_ref[...], preferred_element_type=jnp.float32)
    up = jnp.dot(x, wu_ref[...], preferred_element_type=jnp.float32)
    # SiLU(gate) * up in f32 on the VPU/EUP.
    act = gate * jax.nn.sigmoid(gate) * up
    acc_ref[...] += jnp.dot(act.astype(wd_ref.dtype), wd_ref[...],
                            preferred_element_type=jnp.float32)

    @pl.when(k == pl.num_programs(2) - 1)
    def _store():
        o_ref[...] = acc_ref[...].astype(o_ref.dtype)


def llama_mlp(x, w_gate, w_up, w_down, *, tm=None, tk=None, num_i_splits=1,
              vmem_budget_frac=0.70):
    """Fused LlamaMLP forward.

    x        : (..., H) activations (output has the same shape/dtype)
    w_gate   : (H, I)   gate projection (column half 0 of merged gate_up_proj)
    w_up     : (H, I)   up projection   (column half 1 of merged gate_up_proj)
    w_down   : (I, H)   down projection
    tm / tk  : requested token-tile / intermediate-tile sizes (auto if None)
    num_i_splits : split the intermediate axis into this many independent
                   partial sums (v7x decode: 2 to occupy both TensorCores).
    """
    orig_shape = x.shape
    H = x.shape[-1]
    x2 = x.reshape(-1, H)
    T = x2.shape[0]
    I = w_gate.shape[1]
    assert w_up.shape == (H, I) and w_down.shape == (I, H)
    assert H % 128 == 0, "hidden_size must be a multiple of 128 (lane-dense)"

    out_dtype = x.dtype
    S = int(num_i_splits)
    w_bytes = jnp.dtype(w_gate.dtype).itemsize
    x_bytes = 2                                   # x streamed as bf16
    o_bytes = jnp.dtype(out_dtype).itemsize

    vmem_cap = _vmem_capacity_bytes()
    budget = int(vmem_cap * vmem_budget_frac)

    # Generation-aware default tiles: big on 128 MiB parts (v5e/v6e), modest
    # on 64 MiB parts (v7x).
    if tm is None:
        tm = 512 if vmem_cap >= 96 * 1024 * 1024 else 256
    if tk is None:
        tk = 1024 if vmem_cap >= 96 * 1024 * 1024 else 512

    TK_ALIGN = 256                                # MXU-friendly on all gens
    I_pad = _round_up(I, S * TK_ALIGN)
    k_extent = I_pad // S                         # per-split contraction extent

    tm = max(8, _round_up(min(tm, _round_up(T, 8)), 8))

    def working_set(tm_, tk_):
        acc = tm_ * H * 4                                 # resident f32 acc
        xbuf = 2 * tm_ * H * x_bytes                      # double-buffered x
        wbuf = 2 * (2 * H * tk_ + tk_ * H) * w_bytes      # dbl-buffered weights
        obuf = 2 * tm_ * H * o_bytes                      # double-buffered out
        return acc + xbuf + wbuf + obuf

    # tk: largest 256-multiple <= requested that divides the per-split extent;
    # shrink (tk first, then tm) until the working set fits the VMEM budget.
    tk_cands = [d for d in range(TK_ALIGN, k_extent + 1, TK_ALIGN)
                if k_extent % d == 0 and d <= max(tk, TK_ALIGN)]
    if not tk_cands:
        tk_cands = [TK_ALIGN]
    tk = tk_cands[-1]
    while len(tk_cands) > 1 and working_set(tm, tk) > budget:
        tk_cands.pop()
        tk = tk_cands[-1]
    while tm > 8 and working_set(tm, tk) > budget:
        tm = max(8, _round_up(tm // 2, 8))

    T_pad = _round_up(max(T, 1), tm)
    k_steps = k_extent // tk

    # bf16 activations for the MXU (vLLM activations are already bf16; this is
    # a no-op there) + zero padding for ragged shapes.
    x2 = x2.astype(jnp.bfloat16)
    if T_pad != T:
        x2 = jnp.pad(x2, ((0, T_pad - T), (0, 0)))
    if I_pad != I:
        pad_i = I_pad - I
        w_gate = jnp.pad(w_gate, ((0, 0), (0, pad_i)))
        w_up = jnp.pad(w_up, ((0, 0), (0, pad_i)))
        w_down = jnp.pad(w_down, ((0, pad_i), (0, 0)))

    grid = (S, T_pad // tm, k_steps)
    vmem_limit = int(min(vmem_cap * 0.9, max(working_set(tm, tk) * 2, 32 << 20)))

    partials = pl.pallas_call(
        _fused_mlp_kernel,
        out_shape=jax.ShapeDtypeStruct((S, T_pad, H), out_dtype),
        grid_spec=pltpu.PrefetchScalarGridSpec(
            num_scalar_prefetch=0,
            grid=grid,
            in_specs=[
                # x stays resident across the k (reduction) axis.
                pl.BlockSpec((tm, H), lambda s, i, k: (i, 0)),
                pl.BlockSpec((H, tk), lambda s, i, k: (0, s * k_steps + k)),
                pl.BlockSpec((H, tk), lambda s, i, k: (0, s * k_steps + k)),
                pl.BlockSpec((tk, H), lambda s, i, k: (s * k_steps + k, 0)),
            ],
            out_specs=pl.BlockSpec((None, tm, H), lambda s, i, k: (s, i, 0)),
            scratch_shapes=[pltpu.VMEM((tm, H), jnp.float32)],
        ),
        compiler_params=pltpu.CompilerParams(
            # Keep the reduction (k) axis innermost / "arbitrary".
            dimension_semantics=("parallel", "parallel", "arbitrary"),
            vmem_limit_bytes=vmem_limit,
        ),
    )(x2, w_gate, w_up, w_down)

    if S > 1:
        out2 = partials.astype(jnp.float32).sum(axis=0).astype(out_dtype)
    else:
        out2 = partials[0]
    if T_pad != T:
        out2 = out2[:T]
    return out2.reshape(orig_shape)


def llama_mlp_reference(x, w_gate, w_up, w_down):
    """Pure-JAX reference with the same bf16-MXU / f32-accumulate contract."""
    H = x.shape[-1]
    x2 = x.reshape(-1, H).astype(jnp.bfloat16)
    gate = jnp.dot(x2, w_gate, preferred_element_type=jnp.float32)
    up = jnp.dot(x2, w_up, preferred_element_type=jnp.float32)
    act = gate * jax.nn.sigmoid(gate) * up
    out = jnp.dot(act.astype(jnp.bfloat16), w_down,
                  preferred_element_type=jnp.float32)
    return out.reshape(x.shape).astype(x.dtype)


def _check(out, ref):
    assert out.shape == ref.shape and out.dtype == ref.dtype
    o = out.astype(jnp.float32)
    r = ref.astype(jnp.float32)
    assert jnp.allclose(o, r, rtol=3e-2, atol=3e-3), \
        float(jnp.max(jnp.abs(o - r)))


if __name__ == "__main__":
    HIDDEN = 256            # multiple of 128 (lane-dense)
    INTERMEDIATE = 2048     # multiple of 256

    key = jax.random.PRNGKey(0)
    kx1, kx2, kg, ku, kd = jax.random.split(key, 5)

    # Weights stored in bf16 (half the DMA bytes, native MXU rate). These are
    # the two column halves of vLLM's merged gate_up_proj weight + down_proj.
    w_gate = (0.02 * jax.random.normal(kg, (HIDDEN, INTERMEDIATE))).astype(jnp.bfloat16)
    w_up = (0.02 * jax.random.normal(ku, (HIDDEN, INTERMEDIATE))).astype(jnp.bfloat16)
    w_down = (0.02 * jax.random.normal(kd, (INTERMEDIATE, HIDDEN))).astype(jnp.bfloat16)

    # Case 1: divisible shapes, auto (generation-aware) tiling, k-accumulation.
    T1 = 16
    x1 = jax.random.normal(kx1, (T1, HIDDEN), dtype=jnp.float32).astype(jnp.bfloat16)
    fused = jax.jit(llama_mlp)
    out1 = jax.block_until_ready(fused(x1, w_gate, w_up, w_down))
    ref1 = jax.block_until_ready(llama_mlp_reference(x1, w_gate, w_up, w_down))
    _check(out1, ref1)

    # Case 2: ragged token count (exercises the token-padding path) with the
    # intermediate axis split in two partial sums (v7x dual-TensorCore decode
    # pattern; numerically identical on any TPU).
    T2 = 13
    x2 = jax.random.normal(kx2, (T2, HIDDEN), dtype=jnp.float32).astype(jnp.bfloat16)
    fused_split = jax.jit(functools.partial(llama_mlp, num_i_splits=2,
                                            tm=64, tk=256))
    out2 = jax.block_until_ready(fused_split(x2, w_gate, w_up, w_down))
    ref2 = jax.block_until_ready(llama_mlp_reference(x2, w_gate, w_up, w_down))
    _check(out2, ref2)

    print("KERNEL_OK")
</pallas_src>

<mosaic_0001>
module attributes {stable_mosaic.version = 11 : i64} {
  func.func @_fused_mlp_kernel(%arg0: i32, %arg1: i32, %arg2: i32, %arg3: memref<16x256xbf16, #tpu.memory_space<vmem>>, %arg4: memref<256x512xbf16, #tpu.memory_space<vmem>>, %arg5: memref<256x512xbf16, #tpu.memory_space<vmem>>, %arg6: memref<512x256xbf16, #tpu.memory_space<vmem>>, %arg7: memref<1x16x256xbf16, #tpu.memory_space<vmem>>, %arg8: memref<16x256xf32, #tpu.memory_space<vmem>>) attributes {dimension_semantics = [#tpu.dimension_semantics<parallel>, #tpu.dimension_semantics<parallel>, #tpu.dimension_semantics<arbitrary>], iteration_bounds = array<i64: 1, 1, 4>, scalar_prefetch = 0 : i64, scratch_operands = 1 : i64, tpu.core_type = #tpu.core_type<tc>, window_params = [{transform_indices = @transform_0, window_bounds = array<i64: 16, 256>}, {transform_indices = @transform_1, window_bounds = array<i64: 256, 512>}, {transform_indices = @transform_2, window_bounds = array<i64: 256, 512>}, {transform_indices = @transform_3, window_bounds = array<i64: 512, 256>}, {transform_indices = @transform_4, window_bounds = array<i64: 1, 16, 256>}]} {
    %c0_i32 = arith.constant 0 : i32
    %0 = arith.cmpi eq, %arg2, %c0_i32 : i32
    %1 = arith.extui %0 : i1 to i32
    %c0_i32_0 = arith.constant 0 : i32
    %2 = arith.cmpi ne, %1, %c0_i32_0 : i32
    scf.if %2 {
      %cst_16 = arith.constant 0.000000e+00 : f32
      %24 = vector.broadcast %cst_16 : f32 to vector<16x256xf32>
      %c0_17 = arith.constant 0 : index
      %c0_18 = arith.constant 0 : index
      %25 = vector.load %arg8[%c0_17, %c0_18] : memref<16x256xf32, #tpu.memory_space<vmem>>, vector<16x256xf32>
      tpu.vector_store %arg8[%c0_17, %c0_18], %24 {strides = array<i32>} : memref<16x256xf32, #tpu.memory_space<vmem>>, vector<16x256xf32>,
    } else {
    }
    %c0 = arith.constant 0 : index
    %c0_1 = arith.constant 0 : index
    %3 = vector.load %arg3[%c0, %c0_1] : memref<16x256xbf16, #tpu.memory_space<vmem>>, vector<16x256xbf16>
    %c0_2 = arith.constant 0 : index
    %c0_3 = arith.constant 0 : index
    %4 = vector.load %arg4[%c0_2, %c0_3] : memref<256x512xbf16, #tpu.memory_space<vmem>>, vector<256x512xbf16>
    %cst = arith.constant dense<0.000000e+00> : vector<16x512xf32>
    %5 = tpu.matmul %3, %4, %cst {dimension_numbers = #tpu.dot_dimension_numbers<[1], [0], [0], [1], [0, 0, 1, 1], [], []>} : vector<16x256xbf16>, vector<256x512xbf16>, vector<16x512xf32> -> vector<16x512xf32>
    %c0_4 = arith.constant 0 : index
    %c0_5 = arith.constant 0 : index
    %6 = vector.load %arg5[%c0_4, %c0_5] : memref<256x512xbf16, #tpu.memory_space<vmem>>, vector<256x512xbf16>
    %cst_6 = arith.constant dense<0.000000e+00> : vector<16x512xf32>
    %7 = tpu.matmul %3, %6, %cst_6 {dimension_numbers = #tpu.dot_dimension_numbers<[1], [0], [0], [1], [0, 0, 1, 1], [], []>} : vector<16x256xbf16>, vector<256x512xbf16>, vector<16x512xf32> -> vector<16x512xf32>
    %8 = arith.negf %5 : vector<16x512xf32>
    %9 = math.exp %8 : vector<16x512xf32>
    %cst_7 = arith.constant 1.000000e+00 : f32
    %10 = vector.broadcast %cst_7 : f32 to vector<16x512xf32>
    %11 = arith.addf %10, %9 : vector<16x512xf32>
    %12 = arith.divf %10, %11 : vector<16x512xf32>
    %13 = arith.mulf %5, %12 : vector<16x512xf32>
    %14 = arith.mulf %13, %7 : vector<16x512xf32>
    %c0_8 = arith.constant 0 : index
    %c0_9 = arith.constant 0 : index
    %15 = vector.load %arg8[%c0_8, %c0_9] : memref<16x256xf32, #tpu.memory_space<vmem>>, vector<16x256xf32>
    %16 = arith.truncf %14 : vector<16x512xf32> to vector<16x512xbf16>
    %c0_10 = arith.constant 0 : index
    %c0_11 = arith.constant 0 : index
    %17 = vector.load %arg6[%c0_10, %c0_11] : memref<512x256xbf16, #tpu.memory_space<vmem>>, vector<512x256xbf16>
    %cst_12 = arith.constant dense<0.000000e+00> : vector<16x256xf32>
    %18 = tpu.matmul %16, %17, %cst_12 {dimension_numbers = #tpu.dot_dimension_numbers<[1], [0], [0], [1], [0, 0, 1, 1], [], []>} : vector<16x512xbf16>, vector<512x256xbf16>, vector<16x256xf32> -> vector<16x256xf32>
    %19 = arith.addf %15, %18 : vector<16x256xf32>
    %c0_13 = arith.constant 0 : index
    %c0_14 = arith.constant 0 : index
    %20 = vector.load %arg8[%c0_13, %c0_14] : memref<16x256xf32, #tpu.memory_space<vmem>>, vector<16x256xf32>
    tpu.vector_store %arg8[%c0_13, %c0_14], %19 {strides = array<i32>} : memref<16x256xf32, #tpu.memory_space<vmem>>, vector<16x256xf32>,
    %c3_i32 = arith.constant 3 : i32
    %21 = arith.cmpi eq, %arg2, %c3_i32 : i32
    %22 = arith.extui %21 : i1 to i32
    %c0_i32_15 = arith.constant 0 : i32
    %23 = arith.cmpi ne, %22, %c0_i32_15 : i32
    scf.if %23 {
      %c0_16 = arith.constant 0 : index
      %c0_17 = arith.constant 0 : index
      %24 = vector.load %arg8[%c0_16, %c0_17] : memref<16x256xf32, #tpu.memory_space<vmem>>, vector<16x256xf32>
      %25 = arith.truncf %24 : vector<16x256xf32> to vector<16x256xbf16>
      %c0_18 = arith.constant 0 : index
      %c0_19 = arith.constant 0 : index
      %c0_20 = arith.constant 0 : index
      %26 = vector.load %arg7[%c0_18, %c0_19, %c0_20] : memref<1x16x256xbf16, #tpu.memory_space<vmem>>, vector<1x16x256xbf16>
      %27 = vector.shape_cast %26 : vector<1x16x256xbf16> to vector<16x256xbf16>
      %28 = vector.shape_cast %25 : vector<16x256xbf16> to vector<1x16x256xbf16>
      tpu.vector_store %arg7[%c0_18, %c0_19, %c0_20], %28 {strides = array<i32>} : memref<1x16x256xbf16, #tpu.memory_space<vmem>>, vector<1x16x256xbf16>,
    } else {
    }
    return
  }
  func.func @transform_0(%arg0: i32, %arg1: i32, %arg2: i32) -> (i32, i32) {
    %c0_i32 = arith.constant 0 : i32
    %c0_i32_0 = arith.constant 0 : i32
    return %arg1, %c0_i32 : i32, i32
  }
  func.func @transform_1(%arg0: i32, %arg1: i32, %arg2: i32) -> (i32, i32) {
    %c4_i32 = arith.constant 4 : i32
    %0 = arith.muli %arg0, %c4_i32 : i32
    %1 = arith.addi %0, %arg2 : i32
    %c0_i32 = arith.constant 0 : i32
    %c0_i32_0 = arith.constant 0 : i32
    return %c0_i32, %1 : i32, i32
  }
  func.func @transform_2(%arg0: i32, %arg1: i32, %arg2: i32) -> (i32, i32) {
    %c4_i32 = arith.constant 4 : i32
    %0 = arith.muli %arg0, %c4_i32 : i32
    %1 = arith.addi %0, %arg2 : i32
    %c0_i32 = arith.constant 0 : i32
    %c0_i32_0 = arith.constant 0 : i32
    return %c0_i32, %1 : i32, i32
  }
  func.func @transform_3(%arg0: i32, %arg1: i32, %arg2: i32) -> (i32, i32) {
    %c4_i32 = arith.constant 4 : i32
    %0 = arith.muli %arg0, %c4_i32 : i32
    %1 = arith.addi %0, %arg2 : i32
    %c0_i32 = arith.constant 0 : i32
    %c0_i32_0 = arith.constant 0 : i32
    return %1, %c0_i32 : i32, i32
  }
  func.func @transform_4(%arg0: i32, %arg1: i32, %arg2: i32) -> (i32, i32, i32) {
    %c0_i32 = arith.constant 0 : i32
    %c0_i32_0 = arith.constant 0 : i32
    return %arg0, %arg1, %c0_i32 : i32, i32, i32
  }
}

</mosaic_0001>

<bundles_post_ra>
// kernel: llama_mlp.1
= control target key start
LH: loop header
LB: loop body
LE: loop exit
PB: predicated region body
PF: predicated region fallthrough
CT: control target
= control target key end

     0   :  { %s3421_s0 = inlined_call_operand.hbm [shape: bf16[16,256], index: 0, kind: input, shape index: {}]   ;;  %s3422_s1 = inlined_call_operand.hbm [shape: bf16[256,2048], index: 1, kind: input, shape index: {}]   ;;  %s3423_s2 = inlined_call_operand.hbm [shape: bf16[256,2048], index: 2, kind: input, shape index: {}]   ;;  %s3424_s3 = inlined_call_operand.hbm [shape: bf16[2048,256], index: 3, kind: input, shape index: {}]   ;;  %s3425_s4 = inlined_call_operand.hbm [shape: bf16[1,16,256], index: 4, kind: output, shape index: {}]  }
   0x1   :  { %3440 = sst [smem:[#allocation17_spill]] %s3422_s1 }
   0x2   :  { %9 = vsyncpa [#allocation4], 0 }
   0x3   :  { %10 = vsyncpa [#allocation7], 0 }
   0x4   :  { %12 = vsyncpa [#allocation7 + $0x1], 0 }
   0x5   :  { %13 = vsyncpa [#allocation10], 0 }
   0x6   :  { %15 = vsyncpa [#allocation10 + $0x1], 0 }
   0x7   :  { %16 = vsyncpa [#allocation5], 0  ;;  %s2937_s15 = smov 0   ;;  %s2939_s16 = smov 0  }
   0x8   :  { %s2941_s17 = smov 0   ;;  %s2943_s18 = smov 0  }
   0x9   :  { %s2945_s19 = smov 0   ;;  %s2947_s20 = smov 0  }
   0xa LB: > { %s34_s21 = sadd.s32 1, %s2893_s19  ;;  %s78_s22 = sadd.s32 1, %s2885_s17  ;;  %s2897_s20 = sphi %s2947_s20, %s22_s20   ;;  %s2893_s19 = sphi %s2945_s19, %s3465_s19   ;;  %s2889_s18 = sphi %s2943_s18, %s3464_s18   ;;  %s2885_s17 = sphi %s2941_s17, %s3463_s17   ;;  %s2881_s16 = sphi %s2939_s16, %s3462_s16   ;;  %s2877_s15 = sphi %s2937_s15, %s3461_s15  }
   0xb   : > { %p35_p0 = scmp.ge.s32.totalorder %s34_s21, 4  ;;  %p85_p1 = scmp.ne.s32.totalorder %s2885_s17, %s2881_s16 }
   0xc   : > { %p86_p2 = scmp.eq.s32.totalorder %s2897_s20, 0  ;;  %p2306_p4 = scmp.lt.s32.totalorder %s2897_s20, 4 }
   0xd   : > { %s3467_s21 = smov (%p35_p0, %s34_s21), 0  ;;  %s220_s24 = sand.u32 1, %s2897_s20  }
   0xe   : > { %3441 = sst [smem:[#allocation16_spill]] %s3467_s21  ;;  %p87_p3 = por %p86_p2, %p85_p1 }
   0xf   : > { %s75_s23 = ssub.s32 %s2893_s19, %s3467_s21  ;;  %s3426_s25 = sand.u32 1, %s2885_s17  }
  0x10   : > { %p76_p5 = scmp.eq.s32.totalorder %s75_s23, 0  ;;  %s2267_s26 = sshll.u32 %s2893_s19, 8 }
  0x11   : > { %s2985_s28 = sshll.u32 %s3426_s25, 9  ;;  %s3442_s1 = sld [smem:[#allocation17_spill]] }
  0x12   : > { %s2981_s27 = scalar_select %p76_p5, %s2885_s17, %s78_s22  }
  0x13   : > { %p2994_p6 = pnand %p2306_p4, %p87_p3  ;;  %s224_s7 = scalar_lea.vmem [#allocation6], %s2985_s28 }
  0x14   : > { %s233_s8 = sshll.u32 %s224_s7, 4  ;;  %s3001_s9 = scalar_lea.sflag [#allocation7], %s220_s24  ;;  %s2999_s8 = int_to_ptr.vmem [resolvable:$true] %s233_s8 }
  0x15   : > { %s3443_s6 = scalar_select %p2994_p6, 1, 0 }
  0x16   : > { %p3007_p8 = pneg %p2994_p6 }
  0x17   : > { %s2992_s5 = scalar_lea.hbm %s3442_s1, %s2267_s26  ;;  %s2696_s14 = scalar_lea.hbm %s3442_s1, 32768 }
  0x18   : > { %s2691_s10 = scalar_lea.hbm %s2992_s5, 8192  ;;  %p2697_p11 = scmp.lt.u32.totalorder %s2992_s5, %s3442_s1 }
  0x19   : > { %p2692_p7 = scmp.ne.s32.totalorder %s2992_s5, %s2691_s10  ;;  %p2698_p12 = scmp.lt.u32.totalorder %s2696_s14, %s2691_s10 }
  0x1a   : > { %s3444_s11 = scalar_select %p3007_p8, 1, 0 }
  0x1b   : > { %p2694_p9 = pnand %p3007_p8, %p2692_p7  ;;  %p2699_p13 = por %p2698_p12, %p2697_p11 }
  0x1c   : > { %p2700_p0 = scmp.lt.u32.totalorder %s2691_s10, %s2992_s5 }
  0x1d   : > { %p2695_p10 = pneg %p2694_p9 }
  0x1e   : > { %p2701_p1 = por %p2700_p0, %p2699_p13 }
  0x20   : > { %p2702_p2 = pnand %p2701_p1, %p2695_p10 }
  0x22   : > { %2705 = shalt.err (!%p2702_p2)
}
  0x23   : > { %s2706_s24 = scalar_lea.vmem %s2999_s8, 8192  ;;  %s2899_s29 = smov [#allocation6]  }
  0x24   : > { %p2707_p3 = scmp.ne.s32.totalorder %s2999_s8, %s2706_s24  ;;  %s2711_s30 = sshll.u32 %s2899_s29, 4  ;;  %s2712_s30 = int_to_ptr.vmem [resolvable:$false] %s2711_s30 }
  0x25   : > { %s2713_s7 = scalar_lea.vmem %s2712_s30, 16384  ;;  %p2714_p7 = scmp.lt.s32.totalorder %s2999_s8, %s2712_s30 }
  0x26   : > { %p2709_p4 = pnand %p2707_p3, %p3007_p8  ;;  %p2715_p9 = scmp.lt.s32.totalorder %s2713_s7, %s2706_s24 }
  0x28   : > { %p2710_p5 = pneg %p2709_p4  ;;  %p2716_p11 = por %p2715_p9, %p2714_p7 }
  0x2a   : > { %p2717_p12 = pnand %p2716_p11, %p2710_p5 }
  0x2c   : > { %2720 = shalt.err (!%p2717_p12)
}
  0x2d   : > { %s3427_s10 = smov 1024   ;;  %s3428_s12 = smov 256  }
  0x2e   : > { %s3429_s13 = smov 16   ;;  %s3039_s23 = scalar_lea.hbm %s3423_s2, %s2267_s26 }
  0x2f   : > { %2298 = dma.hbm_to_vmem [thread:$0]  (!%p2994_p6), %s2992_s5, 8192, %s2999_s8, %s3001_s9, %s3427_s10, %s3428_s12, %s3429_s13  }
  0x30   : > { %s3042_s24 = sadd.s32 4294967295, %s2897_s20   ;;  %p91_p10 = scmp.ne.s32.totalorder %s2881_s16, %s2877_s15 }
  0x31   : > { %p3430_p13 = scmp.eq.s32.totalorder %s3042_s24, 0  ;;  %p2039_p0 = scmp.ge.s32.totalorder %s2897_s20, 1 }
  0x32   : > { %p190_p1 = scmp.lt.s32.totalorder %s2897_s20, 5  ;;  %s2903_s26 = smov [#allocation3]  }
  0x33   : > { %p3051_p2 = por %p3430_p13, %p91_p10  ;;  %s206_s8 = sshll.u32 %s2903_s26, 4  ;;  %s207_s8 = int_to_ptr.vmem [resolvable:$true] %s206_s8 }
  0x34   : > { %p3055_p3 = pnand %p2039_p0, %p190_p1  ;;  %s247_s30 = scalar_lea.vmem [#allocation8], %s2985_s28 }
  0x35   : > { %s3445_s29 = scalar_select %p3051_p2, 1, 0 }
  0x36   : > { %s3446_s5 = scalar_select %p3055_p3, 1, 0 }
  0x37   : > { %p2291_p4 = pneg %p3055_p3  ;;  %s256_s7 = sshll.u32 %s247_s30, 4  ;;  %s3068_s7 = int_to_ptr.vmem [resolvable:$true] %s256_s7 }
  0x38   : > { %s2721_s25 = scalar_lea.hbm %s3421_s0, 256 }
  0x39   : > { %p3063_p5 = pnand %p2291_p4, %p3430_p13  ;;  %p2722_p7 = scmp.ne.s32.totalorder %s3421_s0, %s2721_s25 }
  0x3a   : > { %p2728_p10 = scmp.lt.u32.totalorder %s2721_s25, %s3421_s0 }
  0x3b   : > { %p2723_p9 = pneg %p3063_p5 }
  0x3d   : > { %p2724_p11 = pnand %p2723_p9, %p2722_p7 }
  0x3f   : > { %p2725_p12 = pneg %p2724_p11 }
  0x41   : > { %p2730_p0 = pnand %p2728_p10, %p2725_p12 }
  0x43   : > { %2733 = shalt.err (!%p2730_p0)
}
  0x44   : > { %s2734_s30 = scalar_lea.vmem %s207_s8, 256  ;;  %p2742_p2 = scmp.lt.s32.totalorder %s207_s8, %s207_s8 }
  0x45   : > { %p2735_p1 = scmp.ne.s32.totalorder %s207_s8, %s2734_s30  ;;  %p2743_p3 = scmp.lt.s32.totalorder %s2734_s30, %s2734_s30 }
  0x47   : > { %p2737_p4 = pnand %p2735_p1, %p2723_p9  ;;  %p2744_p6 = por %p2743_p3, %p2742_p2 }
  0x49   : > { %p2738_p13 = pneg %p2737_p4 }
  0x4b   : > { %p2745_p8 = pnand %p2744_p6, %p2738_p13 }
  0x4d   : > { %2748 = shalt.err (!%p2745_p8)
}
  0x4e   : > { %s3438_s10 = smov 128   ;;  %s3439_s12 = smov 8  }
  0x4f   : > { %2294 = dma.hbm_to_vmem [thread:$0]  (!%p3063_p5), %s3421_s0, 256, %s207_s8, [#allocation4], %s3438_s10, %s3438_s10, %s3439_s12  }
  0x50   : > { %s2749_s14 = scalar_lea.hbm %s3039_s23, 8192  ;;  %p3448_p6 = scmp.ne.s32.totalorder %s3444_s11, 0 }
  0x51   : > { %p2750_p2 = scmp.ne.s32.totalorder %s3039_s23, %s2749_s14  ;;  %s2754_s30 = scalar_lea.hbm %s3423_s2, 32768 }
  0x52   : > { %p2755_p3 = scmp.lt.u32.totalorder %s3039_s23, %s3423_s2  ;;  %p2756_p7 = scmp.lt.u32.totalorder %s2754_s30, %s2749_s14 }
  0x53   : > { %p2752_p8 = pnand %p2750_p2, %p3448_p6  ;;  %p2758_p11 = scmp.lt.u32.totalorder %s2749_s14, %s3039_s23 }
  0x54   : > { %p2757_p9 = por %p2756_p7, %p2755_p3 }
  0x55   : > { %p2753_p13 = pneg %p2752_p8 }
  0x56   : > { %p2759_p12 = por %p2758_p11, %p2757_p9 }
  0x58   : > { %p2760_p10 = pnand %p2759_p12, %p2753_p13 }
  0x5a   : > { %2763 = shalt.err (!%p2760_p10)
}
  0x5b   : > { %s2764_s8 = scalar_lea.vmem %s3068_s7, 8192  ;;  %s2906_s15 = smov [#allocation8]  }
  0x5c   : > { %p2765_p5 = scmp.ne.s32.totalorder %s3068_s7, %s2764_s8  ;;  %s2769_s25 = sshll.u32 %s2906_s15, 4  ;;  %s2770_s25 = int_to_ptr.vmem [resolvable:$false] %s2769_s25 }
  0x5d   : > { %s2771_s1 = scalar_lea.vmem %s2770_s25, 16384  ;;  %p2772_p4 = scmp.lt.s32.totalorder %s3068_s7, %s2770_s25 }
  0x5e   : > { %p2767_p0 = pnand %p2765_p5, %p3448_p6  ;;  %p2773_p2 = scmp.lt.s32.totalorder %s2771_s1, %s2764_s8 }
  0x60   : > { %p2768_p1 = pneg %p2767_p0  ;;  %p2774_p8 = por %p2773_p2, %p2772_p4 }
  0x62   : > { %p2775_p3 = pnand %p2774_p8, %p2768_p1 }
  0x64   : > { %2778 = shalt.err (!%p2775_p3)
}
  0x65   : > { %p3449_p13 = scmp.ne.s32.totalorder %s3443_s6, 0  ;;  %s3450_s21 = smov 16  }
  0x66   : > { %s3451_s13 = smov 256   ;;  %s3452_s14 = smov 1024  }
  0x67   : > { %2301 = dma.hbm_to_vmem [thread:$0]  (!%p3449_p13), %s3039_s23, 8192, %s3068_s7, %s3001_s9, %s3452_s14, %s3451_s13, %s3450_s21  }
  0x68   : > { %s2270_s22 = sshll.u32 %s2893_s19, 13  ;;  %s270_s26 = scalar_lea.vmem [#allocation9], %s2985_s28 }
  0x69   : > { %s280_s30 = sshll.u32 %s270_s26, 4  ;;  %s3119_s25 = scalar_lea.hbm %s3424_s3, %s2270_s22  ;;  %s3121_s30 = int_to_ptr.vmem [resolvable:$true] %s280_s30 }
  0x6a   : > { %s3453_s1 = sand.u32 1, %s2885_s17   ;;  %s2779_s12 = scalar_lea.hbm %s3119_s25, 8192 }
  0x6b   : > { %s3125_s10 = scalar_lea.sflag [#allocation10], %s3453_s1  ;;  %p2780_p7 = scmp.ne.s32.totalorder %s3119_s25, %s2779_s12 }
  0x6c   : > { %s2784_s23 = scalar_lea.hbm %s3424_s3, 32768  ;;  %p2785_p12 = scmp.lt.u32.totalorder %s3119_s25, %s3424_s3 }
  0x6d   : > { %p2782_p9 = pnand %p2780_p7, %p3448_p6  ;;  %p2786_p10 = scmp.lt.u32.totalorder %s2784_s23, %s2779_s12 }
  0x6e   : > { %p2788_p0 = scmp.lt.u32.totalorder %s2779_s12, %s3119_s25 }
  0x6f   : > { %p2783_p11 = pneg %p2782_p9  ;;  %p2787_p5 = por %p2786_p10, %p2785_p12 }
  0x71   : > { %p2789_p1 = por %p2788_p0, %p2787_p5 }
  0x73   : > { %p2790_p4 = pnand %p2789_p1, %p2783_p11 }
  0x75   : > { %2793 = shalt.err (!%p2790_p4)
}
  0x76   : > { %s2794_s13 = scalar_lea.vmem %s3121_s30, 8192  ;;  %s2907_s14 = smov [#allocation9]  }
  0x77   : > { %p2795_p2 = scmp.ne.s32.totalorder %s3121_s30, %s2794_s13  ;;  %s2799_s22 = sshll.u32 %s2907_s14, 4  ;;  %s2800_s22 = int_to_ptr.vmem [resolvable:$false] %s2799_s22 }
  0x78   : > { %s2801_s26 = scalar_lea.vmem %s2800_s22, 16384  ;;  %p2802_p7 = scmp.lt.s32.totalorder %s3121_s30, %s2800_s22 }
  0x79   : > { %p2797_p8 = pnand %p2795_p2, %p3448_p6  ;;  %p2803_p9 = scmp.lt.s32.totalorder %s2801_s26, %s2794_s13 }
  0x7b   : > { %p2798_p3 = pneg %p2797_p8  ;;  %p2804_p12 = por %p2803_p9, %p2802_p7 }
  0x7d   : > { %p2805_p10 = pnand %p2804_p12, %p2798_p3 }
  0x7f   : > { %2808 = shalt.err (!%p2805_p10)
}
  0x80   : > { %s3454_s12 = smov 8   ;;  %s3455_s8 = smov 128  }
  0x81   : > { %2304 = dma.hbm_to_vmem [thread:$0]  (!%p3449_p13), %s3119_s25, 8192, %s3121_s30, %s3125_s10, %s3455_s8, %s3455_s8, %s3454_s12  }
  0x82   : > { %p3456_p6 = scmp.ne.s32.totalorder %s3446_s5, 0 }
  0x83   : > { %p3457_p11 = scmp.eq.s32.totalorder (!%p3456_p6), %s3042_s24, 0 }
  0x84   : > { %292 = sbr.rel (%p3456_p6) target bundleno = 824 (0x338), region = 36 }
  0x8b   : > { %2860 = dma.done.wait (%p3457_p11), [#allocation4], 256   ;;  %p3458_p5 = pmov %p3457_p11 }
  0x8c   : > { %s298_s6 = sand.u32 1, %s3042_s24   ;;  %s300_s11 = sand.u32 1, %s2881_s16  }
  0x8d   : > { %2862 = vsyncadd (%p3458_p5), [#allocation4], 4294967040  ;;  %s2054_s15 = sshll.u32 %s300_s11, 9  ;;  %s299_s1 = scalar_lea.sflag [#allocation7], %s298_s6 }
  0x8e   : > { %s3160_s28 = scalar_lea.vmem [#allocation6], %s2054_s15  ;;  %p3459_p0 = scmp.ne.s32.totalorder %s3445_s29, 0 }
  0x90   : > { %2864 = dma.done.wait (%p3459_p0), %s299_s1, 16384  }
  0x91   : > { %2866 = vsyncadd (%p3459_p0), %s299_s1, 4294950912  ;;  %s3166_s5 = scalar_lea.vmem [#allocation8], %s2054_s15  ;;  %s317_s10 = scalar_lea.sflag [#allocation10], %s300_s11 }
  0x92   : > { %s3168_s30 = scalar_lea.vmem [#allocation9], %s2054_s15 }
  0x93   : > { %2868 = dma.done.wait (%p3459_p0), %s317_s10, 8192  }
  0x94   : > { %2870 = vsyncadd (%p3459_p0), %s317_s10, 4294959104  ;;  %p2057_p13 = scmp.ne.s32.totalorder %s2889_s18, 0 }
  0x95   : > { %v2908_v0 = vmov (!%p2057_p13), 0.0  }
  0x96   : > { %364 = sbr.rel (%p2057_p13) target bundleno = 157 (0x9d), region = 56  ;;  %365 = vst [vmem:[#allocation2] sm:$0xff] (!%p2057_p13), %v2908_v0  ;;  %366 = vst [vmem:[#allocation2 + $0x8] sm:$0xff] (!%p2057_p13), %v2908_v0 }
  0x97   : > { %367 = vst [vmem:[#allocation2 + $0x10] sm:$0xff] (!%p2057_p13), %v2908_v0  ;;  %368 = vst [vmem:[#allocation2 + $0x18] sm:$0xff] (!%p2057_p13), %v2908_v0 }
  0x9d PF: > { %v2368_v1 = vld [vmem:[%s3160_s28 + $0x4] ss:$16 sps:$4 sm:$0xff]   ;;  %v2370_v2 = vld [vmem:[%s3160_s28] ss:$16 sps:$4 sm:$0xff]   ;;  %v2448_v61 = vld [vmem:[%s3160_s28 + $0xc] ss:$16 sps:$4 sm:$0xff]  }
  0x9e   : > { %765 = vmatprep.subr.bf16.mxu1 %v2368_v1  ;;  %v2371_v3 = vld [vmem:[%s3160_s28 + $0x24] ss:$16 sps:$4 sm:$0xff]   ;;  %v2373_v4 = vld [vmem:[%s3160_s28 + $0x20] ss:$16 sps:$4 sm:$0xff]   ;;  %v2446_v0 = vld [vmem:[%s3160_s28 + $0x8] ss:$16 sps:$4 sm:$0xff]  }
  0x9f   : > { %766 = vmatpush1.bf16.msra.mxu1 %v2370_v2  ;;  %v2374_v5 = vld [vmem:[%s3160_s28 + $0x44] ss:$16 sps:$4 sm:$0xff]   ;;  %v2376_v6 = vld [vmem:[%s3160_s28 + $0x40] ss:$16 sps:$4 sm:$0xff]   ;;  %v2454_v2 = vld [vmem:[%s3160_s28 + $0x2c] ss:$16 sps:$4 sm:$0xff]  }
  0xa0   : > { %767 = vmatprep.subr.bf16.mxu1 %v2371_v3  ;;  %v2377_v7 = vld [vmem:[%s3160_s28 + $0x64] ss:$16 sps:$4 sm:$0xff]   ;;  %v2379_v8 = vld [vmem:[%s3160_s28 + $0x60] ss:$16 sps:$4 sm:$0xff]   ;;  %p2260_p1 = scmp.ne.s32.totalorder %s2889_s18, 3 }
  0xa1   : > { %v2391_v9 = vld [vmem:[%s3166_s5 + $0x4] ss:$16 sps:$4 sm:$0xff]   ;;  %v2394_v10 = vld [vmem:[%s3166_s5] ss:$16 sps:$4 sm:$0xff]  }
  0xa2   : > { %v2380_v11 = vld [vmem:[%s3160_s28 + $0x84] ss:$16 sps:$4 sm:$0xff]   ;;  %1235 = vmatprep.subr.bf16.mxu0 %v2391_v9  ;;  %v2400_v13 = vld [vmem:[%s3166_s5 + $0x20] ss:$16 sps:$4 sm:$0xff]   ;;  %v2466_v9 = vld [vmem:[%s3160_s28 + $0x6c] ss:$16 sps:$4 sm:$0xff]  }
  0xa3   : > { %768 = vmatpush1.bf16.msra.mxu1 %v2373_v4  ;;  %v2397_v12 = vld [vmem:[%s3166_s5 + $0x24] ss:$16 sps:$4 sm:$0xff]   ;;  %1236 = vmatpush1.bf16.msra.mxu0 %v2394_v10  ;;  %v2382_v14 = vld [vmem:[%s3160_s28 + $0x80] ss:$16 sps:$4 sm:$0xff]   ;;  %v2452_v4 = vld [vmem:[%s3160_s28 + $0x28] ss:$16 sps:$4 sm:$0xff]  }
  0xa4   : > { %769 = vmatprep.subr.bf16.mxu1 %v2374_v5  ;;  %1237 = vmatprep.subr.bf16.mxu0 %v2397_v12  ;;  %v2383_v15 = vld [vmem:[%s3160_s28 + $0xa4] ss:$16 sps:$4 sm:$0xff]   ;;  %v2406_v17 = vld [vmem:[%s3166_s5 + $0x40] ss:$16 sps:$4 sm:$0xff]   ;;  %v2464_v10 = vld [vmem:[%s3160_s28 + $0x68] ss:$16 sps:$4 sm:$0xff]  }
  0xa5   : > { %v2403_v16 = vld [vmem:[%s3166_s5 + $0x44] ss:$16 sps:$4 sm:$0xff]   ;;  %v2385_v18 = vld [vmem:[%s3160_s28 + $0xa0] ss:$16 sps:$4 sm:$0xff]   ;;  %v2470_v12 = vld [vmem:[%s3160_s28 + $0x88] ss:$16 sps:$4 sm:$0xff]  }
  0xa6   : > { %v2409_v19 = vld [vmem:[%s3166_s5 + $0x64] ss:$16 sps:$4 sm:$0xff]   ;;  %v2388_v21 = vld [vmem:[%s3160_s28 + $0xc0] ss:$16 sps:$4 sm:$0xff]  }
  0xa7   : > { %770 = vmatpush1.bf16.msra.mxu1 %v2376_v6  ;;  %1238 = vmatpush1.bf16.msra.mxu0 %v2400_v13  ;;  %v2386_v20 = vld [vmem:[%s3160_s28 + $0xc4] ss:$16 sps:$4 sm:$0xff]   ;;  %v2412_v22 = vld [vmem:[%s3166_s5 + $0x60] ss:$16 sps:$4 sm:$0xff]   ;;  %v2460_v6 = vld [vmem:[%s3160_s28 + $0x4c] ss:$16 sps:$4 sm:$0xff]  }
  0xa8   : > { %771 = vmatprep.subr.bf16.mxu1 %v2377_v7  ;;  %1239 = vmatprep.subr.bf16.mxu0 %v2403_v16  ;;  %v2415_v23 = vld [vmem:[%s3166_s5 + $0x84] ss:$16 sps:$4 sm:$0xff]   ;;  %v2418_v25 = vld [vmem:[%s3166_s5 + $0x80] ss:$16 sps:$4 sm:$0xff]   ;;  %v2478_v13 = vld [vmem:[%s3160_s28 + $0xac] ss:$16 sps:$4 sm:$0xff]  }
  0xa9   : > { %v2389_v24 = vld [vmem:[%s3160_s28 + $0xe4] ss:$16 sps:$4 sm:$0xff]   ;;  %v2393_v26 = vld [vmem:[%s3160_s28 + $0xe0] ss:$16 sps:$4 sm:$0xff]   ;;  %v2482_v16 = vld [vmem:[%s3160_s28 + $0xc8] ss:$16 sps:$4 sm:$0xff]  }
  0xaa   : > { %v2421_v27 = vld [vmem:[%s3166_s5 + $0xa4] ss:$16 sps:$4 sm:$0xff]   ;;  %v2399_v29 = vld [vmem:[%s3160_s28 + $0x100] ss:$16 sps:$4 sm:$0xff]  }
  0xab   : > { %772 = vmatpush1.bf16.msra.mxu1 %v2379_v8  ;;  %1240 = vmatpush1.bf16.msra.mxu0 %v2406_v17  ;;  %v2395_v28 = vld [vmem:[%s3160_s28 + $0x104] ss:$16 sps:$4 sm:$0xff]   ;;  %v2424_v30 = vld [vmem:[%s3166_s5 + $0xa0] ss:$16 sps:$4 sm:$0xff]   ;;  %v2458_v8 = vld [vmem:[%s3160_s28 + $0x48] ss:$16 sps:$4 sm:$0xff]  }
  0xac   : > { %773 = vmatprep.subr.bf16.mxu1 %v2380_v11  ;;  %1241 = vmatprep.subr.bf16.mxu0 %v2409_v19  ;;  %v2427_v31 = vld [vmem:[%s3166_s5 + $0xc4] ss:$16 sps:$4 sm:$0xff]   ;;  %v2430_v33 = vld [vmem:[%s3166_s5 + $0xc0] ss:$16 sps:$4 sm:$0xff]   ;;  %v2472_v11 = vld [vmem:[%s3160_s28 + $0x8c] ss:$16 sps:$4 sm:$0xff]  }
  0xad   : > { %v2401_v32 = vld [vmem:[%s3160_s28 + $0x124] ss:$16 sps:$4 sm:$0xff]   ;;  %v2405_v35 = vld [vmem:[%s3160_s28 + $0x120] ss:$16 sps:$4 sm:$0xff]   ;;  %v2490_v19 = vld [vmem:[%s3160_s28 + $0xec] ss:$16 sps:$4 sm:$0xff]  }
  0xae   : > { %v3208_v34 = vld [vmem:[#allocation3 + $0x4] ss:$8 sps:$4 sm:$0xff]   ;;  %v2436_v38 = vld [vmem:[%s3166_s5 + $0xe0] ss:$16 sps:$4 sm:$0xff]  }
  0xaf   : > { %774 = vmatpush1.bf16.msra.mxu1 %v2382_v14  ;;  %1242 = vmatpush1.bf16.msra.mxu0 %v2412_v22  ;;  %v2433_v36 = vld [vmem:[%s3166_s5 + $0xe4] ss:$16 sps:$4 sm:$0xff]   ;;  %v2411_v39 = vld [vmem:[%s3160_s28 + $0x140] ss:$16 sps:$4 sm:$0xff]   ;;  %v2476_v14 = vld [vmem:[%s3160_s28 + $0xa8] ss:$16 sps:$4 sm:$0xff]  }
  0xb0   : > { %775 = vmatprep.subr.bf16.mxu1 %v2383_v15  ;;  %1243 = vmatprep.subr.bf16.mxu0 %v2415_v23  ;;  %v2407_v37 = vld [vmem:[%s3160_s28 + $0x144] ss:$16 sps:$4 sm:$0xff]   ;;  %v2442_v42 = vld [vmem:[%s3166_s5 + $0x100] ss:$16 sps:$4 sm:$0xff]   ;;  %v2484_v15 = vld [vmem:[%s3160_s28 + $0xcc] ss:$16 sps:$4 sm:$0xff]  }
  0xb1   : > { %797 = vmatprep.mubr.bf16.mxu1 %v3208_v34  ;;  %1267 = vmatprep.mubr.bf16.mxu0 %v3208_v34  ;;  %v2439_v40 = vld [vmem:[%s3166_s5 + $0x104] ss:$16 sps:$4 sm:$0xff]   ;;  %v2417_v43 = vld [vmem:[%s3160_s28 + $0x160] ss:$16 sps:$4 sm:$0xff]   ;;  %v2488_v22 = vld [vmem:[%s3160_s28 + $0xe8] ss:$16 sps:$4 sm:$0xff]  }
  0xb2   : > { %v2413_v41 = vld [vmem:[%s3160_s28 + $0x164] ss:$16 sps:$4 sm:$0xff]   ;;  %v2451_v46 = vld [vmem:[%s3166_s5 + $0x120] ss:$16 sps:$4 sm:$0xff]  }
  0xb3   : > { %776 = vmatpush1.bf16.msra.mxu1 %v2385_v18  ;;  %1244 = vmatpush1.bf16.msra.mxu0 %v2418_v25  ;;  %v2449_v44 = vld [vmem:[%s3166_s5 + $0x124] ss:$16 sps:$4 sm:$0xff]   ;;  %v2423_v47 = vld [vmem:[%s3160_s28 + $0x180] ss:$16 sps:$4 sm:$0xff]   ;;  %v2491_v25 = vld [vmem:[%s3160_s28 + $0x108] ss:$16 sps:$4 sm:$0xff]  }
  0xb4   : > { %777 = vmatprep.subr.bf16.mxu1 %v2386_v20  ;;  %1245 = vmatprep.subr.bf16.mxu0 %v2421_v27  ;;  %v2419_v45 = vld [vmem:[%s3160_s28 + $0x184] ss:$16 sps:$4 sm:$0xff]   ;;  %v2457_v50 = vld [vmem:[%s3166_s5 + $0x140] ss:$16 sps:$4 sm:$0xff]   ;;  %v2496_v27 = vld [vmem:[%s3160_s28 + $0x12c] ss:$16 sps:$4 sm:$0xff]  }
  0xb5   : > { %v2455_v48 = vld [vmem:[%s3166_s5 + $0x144] ss:$16 sps:$4 sm:$0xff]   ;;  %v2429_v51 = vld [vmem:[%s3160_s28 + $0x1a0] ss:$16 sps:$4 sm:$0xff]  }
  0xb6   : > { %v2425_v49 = vld [vmem:[%s3160_s28 + $0x1a4] ss:$16 sps:$4 sm:$0xff]   ;;  %v2463_v54 = vld [vmem:[%s3166_s5 + $0x160] ss:$16 sps:$4 sm:$0xff]  }
  0xb7   : > { %778 = vmatpush1.bf16.msra.mxu1 %v2388_v21  ;;  %1246 = vmatpush1.bf16.msra.mxu0 %v2424_v30  ;;  %v2461_v52 = vld [vmem:[%s3166_s5 + $0x164] ss:$16 sps:$4 sm:$0xff]   ;;  %v2435_v55 = vld [vmem:[%s3160_s28 + $0x1c0] ss:$16 sps:$4 sm:$0xff]   ;;  %v2494_v30 = vld [vmem:[%s3160_s28 + $0x128] ss:$16 sps:$4 sm:$0xff]  }
  0xb8   : > { %779 = vmatprep.subr.bf16.mxu1 %v2389_v24  ;;  %1247 = vmatprep.subr.bf16.mxu0 %v2427_v31  ;;  %v2431_v53 = vld [vmem:[%s3160_s28 + $0x1c4] ss:$16 sps:$4 sm:$0xff]   ;;  %v2469_v58 = vld [vmem:[%s3166_s5 + $0x180] ss:$16 sps:$4 sm:$0xff]   ;;  %v2493_v24 = vld [vmem:[%s3160_s28 + $0x10c] ss:$16 sps:$4 sm:$0xff]  }
  0xb9   : > { %v2467_v56 = vld [vmem:[%s3166_s5 + $0x184] ss:$16 sps:$4 sm:$0xff]   ;;  %v2441_v59 = vld [vmem:[%s3160_s28 + $0x1e0] ss:$16 sps:$4 sm:$0xff]  }
  0xba   : > { %v2437_v57 = vld [vmem:[%s3160_s28 + $0x1e4] ss:$16 sps:$4 sm:$0xff]   ;;  %v3239_v62 = vld [vmem:[#allocation3] ss:$8 sps:$4 sm:$0xff]   ;;  %v2563_v17 = vld [vmem:[%s3168_s30] ss:$8 sps:$4 sm:$0xff]  }
  0xbb   : > { %780 = vmatpush1.bf16.msra.mxu1 %v2393_v26  ;;  %1248 = vmatpush1.bf16.msra.mxu0 %v2430_v33  ;;  %v2473_v60 = vld [vmem:[%s3166_s5 + $0x1a4] ss:$16 sps:$4 sm:$0xff]   ;;  %v2475_v63 = vld [vmem:[%s3166_s5 + $0x1a0] ss:$16 sps:$4 sm:$0xff]  }
  0xbc   : > { %781 = vmatprep.subr.bf16.mxu1 %v2395_v28  ;;  %1249 = vmatprep.subr.bf16.mxu0 %v2433_v36  ;;  %v2479_v1 = vld [vmem:[%s3166_s5 + $0x1c4] ss:$16 sps:$4 sm:$0xff]   ;;  %v2481_v3 = vld [vmem:[%s3166_s5 + $0x1c0] ss:$16 sps:$4 sm:$0xff]  }
  0xbd   : > { %v2485_v5 = vld [vmem:[%s3166_s5 + $0x1e4] ss:$16 sps:$4 sm:$0xff]   ;;  %v2487_v7 = vld [vmem:[%s3166_s5 + $0x1e0] ss:$16 sps:$4 sm:$0xff]  }
  0xbe   : > { %v2565_v18 = vld [vmem:[%s3168_s30 + $0x4] ss:$8 sps:$4 sm:$0xff]   ;;  %v2568_v20 = vld [vmem:[%s3168_s30 + $0x14] ss:$8 sps:$4 sm:$0xff]   ;;  %v2566_v21 = vld [vmem:[%s3168_s30 + $0x10] ss:$8 sps:$4 sm:$0xff]  }
  0xbf   : > { %782 = vmatpush1.bf16.msra.mxu1 %v2399_v29  ;;  %1250 = vmatpush1.bf16.msra.mxu0 %v2436_v38  ;;  %v2571_v23 = vld [vmem:[%s3168_s30 + $0x24] ss:$8 sps:$4 sm:$0xff]   ;;  %v2569_v26 = vld [vmem:[%s3168_s30 + $0x20] ss:$8 sps:$4 sm:$0xff]   ;;  %v2574_v28 = vld [vmem:[%s3168_s30 + $0x34] ss:$8 sps:$4 sm:$0xff]  }
  0xc0   : > { %783 = vmatprep.subr.bf16.mxu1 %v2401_v32  ;;  %1251 = vmatprep.subr.bf16.mxu0 %v2439_v40  ;;  %v2572_v29 = vld [vmem:[%s3168_s30 + $0x30] ss:$8 sps:$4 sm:$0xff]   ;;  %v2577_v31 = vld [vmem:[%s3168_s30 + $0x44] ss:$8 sps:$4 sm:$0xff]   ;;  %v2575_v33 = vld [vmem:[%s3168_s30 + $0x40] ss:$8 sps:$4 sm:$0xff]  }
  0xc1   : > { %v2499_v32 = vld [vmem:[%s3160_s28 + $0x14c] ss:$16 sps:$4 sm:$0xff]   ;;  %v2578_v38 = vld [vmem:[%s3168_s30 + $0x50] ss:$8 sps:$4 sm:$0xff]  }
  0xc2   : > { %v2580_v36 = vld [vmem:[%s3168_s30 + $0x54] ss:$8 sps:$4 sm:$0xff]   ;;  %v2583_v40 = vld [vmem:[%s3168_s30 + $0x64] ss:$8 sps:$4 sm:$0xff]  }
  0xc3   : > { %784 = vmatpush1.bf16.msra.mxu1 %v2405_v35  ;;  %1252 = vmatpush1.bf16.msra.mxu0 %v2442_v42  ;;  %v2497_v35 = vld [vmem:[%s3160_s28 + $0x148] ss:$16 sps:$4 sm:$0xff]  }
  0xc4   : > { %785 = vmatprep.subr.bf16.mxu1 %v2407_v37  ;;  %1253 = vmatprep.subr.bf16.mxu0 %v2449_v44  ;;  %v2502_v37 = vld [vmem:[%s3160_s28 + $0x16c] ss:$16 sps:$4 sm:$0xff]   ;;  %v2581_v42 = vld [vmem:[%s3168_s30 + $0x60] ss:$8 sps:$4 sm:$0xff]  }
  0xc5   : > { %v2508_v44 = vld [vmem:[%s3160_s28 + $0x1ac] ss:$16 sps:$4 sm:$0xff]  }
  0xc7   : > { %786 = vmatpush1.bf16.msra.mxu1 %v2411_v39  ;;  %1254 = vmatpush1.bf16.msra.mxu0 %v2451_v46  ;;  %v2500_v39 = vld [vmem:[%s3160_s28 + $0x168] ss:$16 sps:$4 sm:$0xff]   ;;  %v2511_v46 = vld [vmem:[%s3160_s28 + $0x1cc] ss:$16 sps:$4 sm:$0xff]  }
  0xc8   : > { %787 = vmatprep.subr.bf16.mxu1 %v2413_v41  ;;  %1255 = vmatprep.subr.bf16.mxu0 %v2455_v48  ;;  %v2505_v41 = vld [vmem:[%s3160_s28 + $0x18c] ss:$16 sps:$4 sm:$0xff]  }
  0xc9   : > { %v2514_v48 = vld [vmem:[%s3160_s28 + $0x1ec] ss:$16 sps:$4 sm:$0xff]  }
  0xcb   : > { %788 = vmatpush1.bf16.msra.mxu1 %v2417_v43  ;;  %1256 = vmatpush1.bf16.msra.mxu0 %v2457_v50  ;;  %v2503_v43 = vld [vmem:[%s3160_s28 + $0x188] ss:$16 sps:$4 sm:$0xff]   ;;  %v2517_v50 = vld [vmem:[%s3166_s5 + $0xc] ss:$16 sps:$4 sm:$0xff]  }
  0xcc   : > { %789 = vmatprep.subr.bf16.mxu1 %v2419_v45  ;;  %1257 = vmatprep.subr.bf16.mxu0 %v2461_v52  ;;  %v2506_v45 = vld [vmem:[%s3160_s28 + $0x1a8] ss:$16 sps:$4 sm:$0xff]   ;;  %v2520_v52 = vld [vmem:[%s3166_s5 + $0x2c] ss:$16 sps:$4 sm:$0xff]  }
  0xcf   : > { %790 = vmatpush1.bf16.msra.mxu1 %v2423_v47  ;;  %1258 = vmatpush1.bf16.msra.mxu0 %v2463_v54  ;;  %v2509_v47 = vld [vmem:[%s3160_s28 + $0x1c8] ss:$16 sps:$4 sm:$0xff]   ;;  %v2523_v54 = vld [vmem:[%s3166_s5 + $0x4c] ss:$16 sps:$4 sm:$0xff]  }
  0xd0   : > { %791 = vmatprep.subr.bf16.mxu1 %v2425_v49  ;;  %1259 = vmatprep.subr.bf16.mxu0 %v2467_v56  ;;  %v2512_v49 = vld [vmem:[%s3160_s28 + $0x1e8] ss:$16 sps:$4 sm:$0xff]   ;;  %v2526_v56 = vld [vmem:[%s3166_s5 + $0x6c] ss:$16 sps:$4 sm:$0xff]  }
  0xd3   : > { %792 = vmatpush1.bf16.msra.mxu1 %v2429_v51  ;;  %1260 = vmatpush1.bf16.msra.mxu0 %v2469_v58  ;;  %v2515_v51 = vld [vmem:[%s3166_s5 + $0x8] ss:$16 sps:$4 sm:$0xff]   ;;  %v2529_v58 = vld [vmem:[%s3166_s5 + $0x8c] ss:$16 sps:$4 sm:$0xff]  }
  0xd4   : > { %793 = vmatprep.subr.bf16.mxu1 %v2431_v53  ;;  %1261 = vmatprep.subr.bf16.mxu0 %v2473_v60  ;;  %v2518_v53 = vld [vmem:[%s3166_s5 + $0x28] ss:$16 sps:$4 sm:$0xff]  }
  0xd5   : > { %v2530_v60 = vld [vmem:[%s3166_s5 + $0xa8] ss:$16 sps:$4 sm:$0xff]  }
  0xd7   : > { %794 = vmatpush1.bf16.msra.mxu1 %v2435_v55  ;;  %1262 = vmatpush1.bf16.msra.mxu0 %v2475_v63  ;;  %v2521_v55 = vld [vmem:[%s3166_s5 + $0x48] ss:$16 sps:$4 sm:$0xff]   ;;  %v2586_v63 = vld [vmem:[%s3168_s30 + $0x74] ss:$8 sps:$4 sm:$0xff]  }
  0xd8   : > { %795 = vmatprep.subr.bf16.mxu1 %v2437_v57  ;;  %1263 = vmatprep.subr.bf16.mxu0 %v2479_v1  ;;  %v2524_v57 = vld [vmem:[%s3166_s5 + $0x68] ss:$16 sps:$4 sm:$0xff]  }
  0xd9   : > { %v2533_v1 = vld [vmem:[%s3166_s5 + $0xc8] ss:$16 sps:$4 sm:$0xff]  }
  0xdb   : > { %796 = vmatpush1.bf16.msra.mxu1 %v2441_v59  ;;  %1264 = vmatpush1.bf16.msra.mxu0 %v2481_v3  ;;  %v2527_v59 = vld [vmem:[%s3166_s5 + $0x88] ss:$16 sps:$4 sm:$0xff]   ;;  %v2589_v3 = vld [vmem:[%s3168_s30 + $0x84] ss:$8 sps:$4 sm:$0xff]  }
  0xdc   : > { %808 = vmatprep.subr.bf16.mxu1 %v2448_v61  ;;  %1265 = vmatprep.subr.bf16.mxu0 %v2485_v5  ;;  %v2535_v61 = vld [vmem:[%s3166_s5 + $0xcc] ss:$16 sps:$4 sm:$0xff]   ;;  %v2536_v5 = vld [vmem:[%s3166_s5 + $0xe8] ss:$16 sps:$4 sm:$0xff]  }
  0xde   : > { %798 = vmatmul.mubr.bf16.vlgmr.msra.gmra.mrb[0].mxu1 %v3239_v62 }
  0xdf   : > { %809 = vmatpush1.bf16.msra.mxu1 %v2446_v0  ;;  %840 = vmatprep.mubr.bf16.mxu1 %v3208_v34  ;;  %v2584_v0 = vld [vmem:[%s3168_s30 + $0x70] ss:$8 sps:$4 sm:$0xff]  }
  0xe0   : > { %810 = vmatprep.subr.bf16.mxu1 %v2454_v2  ;;  %1266 = vmatpush1.bf16.msra.mxu0 %v2487_v7  ;;  %v2538_v2 = vld [vmem:[%s3166_s5 + $0xec] ss:$16 sps:$4 sm:$0xff]  }
  0xe1   : > { %1777 = vmatprep.subr.bf16.mxu0 %v2565_v18  ;;  %v2592_v7 = vld [vmem:[%s3168_s30 + $0x94] ss:$8 sps:$4 sm:$0xff]  }
  0xe2   : > { %v2550_v18 = vld [vmem:[%s3166_s5 + $0x16c] ss:$16 sps:$4 sm:$0xff]  }
  0xe3   : > { %811 = vmatpush1.bf16.msra.mxu1 %v2452_v4  ;;  %1268 = vmatmul.mubr.bf16.vlgmr.msra.gmra.mrb[0].mxu0 %v3239_v62  ;;  %v2587_v4 = vld [vmem:[%s3168_s30 + $0x80] ss:$8 sps:$4 sm:$0xff]  }
  0xe4   : > { %812 = vmatprep.subr.bf16.mxu1 %v2460_v6  ;;  %1778 = vmatpush1.bf16.msra.mxu0 %v2563_v17  ;;  %v2541_v6 = vld [vmem:[%s3166_s5 + $0x10c] ss:$16 sps:$4 sm:$0xff]   ;;  %v2545_v17 = vld [vmem:[%s3166_s5 + $0x148] ss:$16 sps:$4 sm:$0xff]  }
  0xe5   : > { %1779 = vmatprep.subr.bf16.mxu0 %v2568_v20  ;;  %v2599_v20 = vld [vmem:[%s3168_s30 + $0xc0] ss:$8 sps:$4 sm:$0xff]  }
  0xe7   : > { %813 = vmatpush1.bf16.msra.mxu1 %v2458_v8  ;;  %v2590_v8 = vld [vmem:[%s3168_s30 + $0x90] ss:$8 sps:$4 sm:$0xff]  }
  0xe8   : > { %814 = vmatprep.subr.bf16.mxu1 %v2466_v9  ;;  %1780 = vmatpush1.bf16.msra.mxu0 %v2566_v21  ;;  %v2539_v9 = vld [vmem:[%s3166_s5 + $0x108] ss:$16 sps:$4 sm:$0xff]  }
  0xe9   : > { %1781 = vmatprep.subr.bf16.mxu0 %v2571_v23  ;;  %v2548_v21 = vld [vmem:[%s3166_s5 + $0x168] ss:$16 sps:$4 sm:$0xff]   ;;  %v2604_v23 = vld [vmem:[%s3168_s30 + $0xd4] ss:$8 sps:$4 sm:$0xff]  }
  0xeb   : > { %815 = vmatpush1.bf16.msra.mxu1 %v2464_v10  ;;  %v2544_v10 = vld [vmem:[%s3166_s5 + $0x12c] ss:$16 sps:$4 sm:$0xff]  }
  0xec   : > { %816 = vmatprep.subr.bf16.mxu1 %v2472_v11  ;;  %1782 = vmatpush1.bf16.msra.mxu0 %v2569_v26  ;;  %v2595_v11 = vld [vmem:[%s3168_s30 + $0xa4] ss:$8 sps:$4 sm:$0xff]  }
  0xed   : > { %1783 = vmatprep.subr.bf16.mxu0 %v2574_v28  ;;  %v2556_v26 = vld [vmem:[%s3166_s5 + $0x1ac] ss:$16 sps:$4 sm:$0xff]   ;;  %v2605_v28 = vld [vmem:[%s3168_s30 + $0xe0] ss:$8 sps:$4 sm:$0xff]  }
  0xef   : > { %817 = vmatpush1.bf16.msra.mxu1 %v2470_v12  ;;  %v2593_v12 = vld [vmem:[%s3168_s30 + $0xa0] ss:$8 sps:$4 sm:$0xff]  }
  0xf0   : > { %818 = vmatprep.subr.bf16.mxu1 %v2478_v13  ;;  %1784 = vmatpush1.bf16.msra.mxu0 %v2572_v29  ;;  %v2542_v13 = vld [vmem:[%s3166_s5 + $0x128] ss:$16 sps:$4 sm:$0xff]  }
  0xf1   : > { %1785 = vmatprep.subr.bf16.mxu0 %v2577_v31  ;;  %v2554_v29 = vld [vmem:[%s3166_s5 + $0x1a8] ss:$16 sps:$4 sm:$0xff]   ;;  %v2610_v31 = vld [vmem:[%s3168_s30 + $0xf4] ss:$8 sps:$4 sm:$0xff]  }
  0xf3   : > { %819 = vmatpush1.bf16.msra.mxu1 %v2476_v14  ;;  %v2547_v14 = vld [vmem:[%s3166_s5 + $0x14c] ss:$16 sps:$4 sm:$0xff]  }
  0xf4   : > { %820 = vmatprep.subr.bf16.mxu1 %v2484_v15  ;;  %1786 = vmatpush1.bf16.msra.mxu0 %v2575_v33  ;;  %v2598_v15 = vld [vmem:[%s3168_s30 + $0xb4] ss:$8 sps:$4 sm:$0xff]   ;;  %v2557_v33 = vld [vmem:[%s3166_s5 + $0x1c8] ss:$16 sps:$4 sm:$0xff]  }
  0xf5   : > { %1787 = vmatprep.subr.bf16.mxu0 %v2580_v36  ;;  %v2560_v36 = vld [vmem:[%s3166_s5 + $0x1e8] ss:$16 sps:$4 sm:$0xff]  }
  0xf7   : > { %821 = vmatpush1.bf16.msra.mxu1 %v2482_v16  ;;  %v2596_v16 = vld [vmem:[%s3168_s30 + $0xb0] ss:$8 sps:$4 sm:$0xff]  }
  0xf8   : > { %822 = vmatprep.subr.bf16.mxu1 %v2490_v19  ;;  %1788 = vmatpush1.bf16.msra.mxu0 %v2578_v38  ;;  %v2601_v19 = vld [vmem:[%s3168_s30 + $0xc4] ss:$8 sps:$4 sm:$0xff]  }
  0xf9   : > { %1789 = vmatprep.subr.bf16.mxu0 %v2583_v40 }
  0xfb   : > { %823 = vmatpush1.bf16.msra.mxu1 %v2488_v22  ;;  %v2553_v22 = vld [vmem:[%s3166_s5 + $0x18c] ss:$16 sps:$4 sm:$0xff]  }
  0xfc   : > { %824 = vmatprep.subr.bf16.mxu1 %v2493_v24  ;;  %1790 = vmatpush1.bf16.msra.mxu0 %v2581_v42  ;;  %v2602_v24 = vld [vmem:[%s3168_s30 + $0xd0] ss:$8 sps:$4 sm:$0xff]  }
  0xfd   : > { %1791 = vmatprep.subr.bf16.mxu0 %v2586_v63 }
  0xff   : > { %825 = vmatpush1.bf16.msra.mxu1 %v2491_v25  ;;  %v2551_v25 = vld [vmem:[%s3166_s5 + $0x188] ss:$16 sps:$4 sm:$0xff]  }
 0x100   : > { %826 = vmatprep.subr.bf16.mxu1 %v2496_v27  ;;  %1792 = vmatpush1.bf16.msra.mxu0 %v2584_v0  ;;  %v2607_v27 = vld [vmem:[%s3168_s30 + $0xe4] ss:$8 sps:$4 sm:$0xff]  }
 0x101   : > { %1793 = vmatprep.subr.bf16.mxu0 %v2589_v3 }
 0x103   : > { %827 = vmatpush1.bf16.msra.mxu1 %v2494_v30  ;;  %v2559_v30 = vld [vmem:[%s3166_s5 + $0x1cc] ss:$16 sps:$4 sm:$0xff]  }
 0x104   : > { %828 = vmatprep.subr.bf16.mxu1 %v2499_v32  ;;  %1794 = vmatpush1.bf16.msra.mxu0 %v2587_v4  ;;  %v2608_v32 = vld [vmem:[%s3168_s30 + $0xf0] ss:$8 sps:$4 sm:$0xff]  }
 0x105   : > { %1795 = vmatprep.subr.bf16.mxu0 %v2592_v7  ;;  %v2611_v7 = vld [vmem:[%s3168_s30 + $0x100] ss:$8 sps:$4 sm:$0xff]  }
 0x107   : > { %829 = vmatpush1.bf16.msra.mxu1 %v2497_v35  ;;  %v2562_v35 = vld [vmem:[%s3166_s5 + $0x1ec] ss:$16 sps:$4 sm:$0xff]  }
 0x108   : > { %830 = vmatprep.subr.bf16.mxu1 %v2502_v37  ;;  %1796 = vmatpush1.bf16.msra.mxu0 %v2590_v8  ;;  %v2613_v37 = vld [vmem:[%s3168_s30 + $0x104] ss:$8 sps:$4 sm:$0xff]   ;;  %v2616_v8 = vld [vmem:[%s3168_s30 + $0x114] ss:$8 sps:$4 sm:$0xff]  }
 0x109   : > { %1797 = vmatprep.subr.bf16.mxu0 %v2595_v11  ;;  %v2617_v11 = vld [vmem:[%s3168_s30 + $0x120] ss:$8 sps:$4 sm:$0xff]  }
 0x10b   : > { %831 = vmatpush1.bf16.msra.mxu1 %v2500_v39 }
 0x10c   : > { %832 = vmatprep.subr.bf16.mxu1 %v2505_v41  ;;  %1798 = vmatpush1.bf16.msra.mxu0 %v2593_v12  ;;  %v2622_v12 = vld [vmem:[%s3168_s30 + $0x134] ss:$8 sps:$4 sm:$0xff]  }
 0x10d   : > { %1799 = vmatprep.subr.bf16.mxu0 %v2598_v15  ;;  %v2623_v15 = vld [vmem:[%s3168_s30 + $0x140] ss:$8 sps:$4 sm:$0xff]  }
 0x10f   : > { %833 = vmatpush1.bf16.msra.mxu1 %v2503_v43 }
 0x110   : > { %834 = vmatprep.subr.bf16.mxu1 %v2508_v44  ;;  %1800 = vmatpush1.bf16.msra.mxu0 %v2596_v16  ;;  %v2628_v16 = vld [vmem:[%s3168_s30 + $0x154] ss:$8 sps:$4 sm:$0xff]  }
 0x111   : > { %1801 = vmatprep.subr.bf16.mxu0 %v2601_v19  ;;  %v2629_v19 = vld [vmem:[%s3168_s30 + $0x160] ss:$8 sps:$4 sm:$0xff]  }
 0x113   : > { %835 = vmatpush1.bf16.msra.mxu1 %v2506_v45 }
 0x114   : > { %836 = vmatprep.subr.bf16.mxu1 %v2511_v46  ;;  %1802 = vmatpush1.bf16.msra.mxu0 %v2599_v20  ;;  %v2634_v20 = vld [vmem:[%s3168_s30 + $0x174] ss:$8 sps:$4 sm:$0xff]  }
 0x115   : > { %1803 = vmatprep.subr.bf16.mxu0 %v2604_v23 }
 0x117   : > { %837 = vmatpush1.bf16.msra.mxu1 %v2509_v47 }
 0x118   : > { %838 = vmatprep.subr.bf16.mxu1 %v2514_v48  ;;  %1804 = vmatpush1.bf16.msra.mxu0 %v2602_v24 }
 0x119   : > { %1805 = vmatprep.subr.bf16.mxu0 %v2607_v27 }
 0x11b   : > { %839 = vmatpush1.bf16.msra.mxu1 %v2512_v49 }
 0x11c   : > { %1278 = vmatprep.subr.bf16.mxu1 %v2517_v50  ;;  %1806 = vmatpush1.bf16.msra.mxu0 %v2605_v28  ;;  %v2640_v28 = vld [vmem:[%s3168_s30 + $0x194] ss:$8 sps:$4 sm:$0xff]  }
 0x11d   : > { %1807 = vmatprep.subr.bf16.mxu0 %v2610_v31  ;;  %v2641_v31 = vld [vmem:[%s3168_s30 + $0x1a0] ss:$8 sps:$4 sm:$0xff]  }
 0x11e   : > { %841 = vmatmul.mubr.bf16.vlgmr.msra.gmra.mrb[4].mxu1 %v3239_v62 }
 0x11f   : > { %1279 = vmatpush1.bf16.msra.mxu1 %v2515_v51  ;;  %1310 = vmatprep.mubr.bf16.mxu1 %v3208_v34  ;;  %v2532_v34 = vld [vmem:[%s3166_s5 + $0xac] ss:$16 sps:$4 sm:$0xff]  }
 0x120   : > { %1280 = vmatprep.subr.bf16.mxu1 %v2520_v52  ;;  %1808 = vmatpush1.bf16.msra.mxu0 %v2608_v32  ;;  %v2646_v32 = vld [vmem:[%s3168_s30 + $0x1b4] ss:$8 sps:$4 sm:$0xff]  }
 0x121   : > { %1820 = vmatprep.subr.bf16.mxu0 %v2613_v37  ;;  %v2652_v37 = vld [vmem:[%s3168_s30 + $0x1d4] ss:$8 sps:$4 sm:$0xff]  }
 0x123   : > { %1281 = vmatpush1.bf16.msra.mxu1 %v2518_v53 }
 0x124   : > { %1282 = vmatprep.subr.bf16.mxu1 %v2523_v54 }
 0x127   : > { %1283 = vmatpush1.bf16.msra.mxu1 %v2521_v55 }
 0x128   : > { %1284 = vmatprep.subr.bf16.mxu1 %v2526_v56 }
 0x12b   : > { %1285 = vmatpush1.bf16.msra.mxu1 %v2524_v57 }
 0x12c   : > { %1286 = vmatprep.subr.bf16.mxu1 %v2529_v58 }
 0x12f   : > { %1287 = vmatpush1.bf16.msra.mxu1 %v2527_v59 }
 0x130   : > { %1288 = vmatprep.subr.bf16.mxu1 %v2532_v34 }
 0x133   : > { %1289 = vmatpush1.bf16.msra.mxu1 %v2530_v60 }
 0x134   : > { %1290 = vmatprep.subr.bf16.mxu1 %v2535_v61 }
 0x137   : > { %1291 = vmatpush1.bf16.msra.mxu1 %v2533_v1 }
 0x138   : > { %1292 = vmatprep.subr.bf16.mxu1 %v2538_v2 }
 0x13b   : > { %1293 = vmatpush1.bf16.msra.mxu1 %v2536_v5 }
 0x13c   : > { %1294 = vmatprep.subr.bf16.mxu1 %v2541_v6 }
 0x13f   : > { %1295 = vmatpush1.bf16.msra.mxu1 %v2539_v9  ;;  %v2614_v9 = vld [vmem:[%s3168_s30 + $0x110] ss:$8 sps:$4 sm:$0xff]  }
 0x140   : > { %1296 = vmatprep.subr.bf16.mxu1 %v2544_v10  ;;  %v2619_v10 = vld [vmem:[%s3168_s30 + $0x124] ss:$8 sps:$4 sm:$0xff]  }
 0x143   : > { %1297 = vmatpush1.bf16.msra.mxu1 %v2542_v13  ;;  %v2620_v13 = vld [vmem:[%s3168_s30 + $0x130] ss:$8 sps:$4 sm:$0xff]  }
 0x144   : > { %1298 = vmatprep.subr.bf16.mxu1 %v2547_v14  ;;  %v2625_v14 = vld [vmem:[%s3168_s30 + $0x144] ss:$8 sps:$4 sm:$0xff]  }
 0x147   : > { %1299 = vmatpush1.bf16.msra.mxu1 %v2545_v17  ;;  %v2626_v17 = vld [vmem:[%s3168_s30 + $0x150] ss:$8 sps:$4 sm:$0xff]  }
 0x148   : > { %1300 = vmatprep.subr.bf16.mxu1 %v2550_v18  ;;  %v2631_v18 = vld [vmem:[%s3168_s30 + $0x164] ss:$8 sps:$4 sm:$0xff]  }
 0x14b   : > { %1301 = vmatpush1.bf16.msra.mxu1 %v2548_v21  ;;  %v2632_v21 = vld [vmem:[%s3168_s30 + $0x170] ss:$8 sps:$4 sm:$0xff]  }
 0x14c   : > { %1302 = vmatprep.subr.bf16.mxu1 %v2553_v22  ;;  %v2637_v22 = vld [vmem:[%s3168_s30 + $0x184] ss:$8 sps:$4 sm:$0xff]  }
 0x14f   : > { %1303 = vmatpush1.bf16.msra.mxu1 %v2551_v25 }
 0x150   : > { %1304 = vmatprep.subr.bf16.mxu1 %v2556_v26  ;;  %v2635_v26 = vld [vmem:[%s3168_s30 + $0x180] ss:$8 sps:$4 sm:$0xff]  }
 0x153   : > { %1305 = vmatpush1.bf16.msra.mxu1 %v2554_v29  ;;  %v2638_v29 = vld [vmem:[%s3168_s30 + $0x190] ss:$8 sps:$4 sm:$0xff]  }
 0x154   : > { %1306 = vmatprep.subr.bf16.mxu1 %v2559_v30  ;;  %v2643_v30 = vld [vmem:[%s3168_s30 + $0x1a4] ss:$8 sps:$4 sm:$0xff]  }
 0x157   : > { %1307 = vmatpush1.bf16.msra.mxu1 %v2557_v33  ;;  %v2644_v33 = vld [vmem:[%s3168_s30 + $0x1b0] ss:$8 sps:$4 sm:$0xff]  }
 0x158   : > { %1308 = vmatprep.subr.bf16.mxu1 %v2562_v35  ;;  %v2649_v35 = vld [vmem:[%s3168_s30 + $0x1c4] ss:$8 sps:$4 sm:$0xff]  }
 0x15b   : > { %1309 = vmatpush1.bf16.msra.mxu1 %v2560_v36  ;;  %v2647_v36 = vld [vmem:[%s3168_s30 + $0x1c0] ss:$8 sps:$4 sm:$0xff]  }
 0x15e   : > { %1311 = vmatmul.mubr.bf16.vlgmr.msra.gmra.mrb[8].mxu1 %v3239_v62 }
 0x1b1   : > { %v799_v38 = vpop.f32.mrb[0].mxu1 }
 0x1b2   : > { %v2188_v39 = vmul.f32 -1.442695, %v799_v38  ;;  %v801_v40 = vpop.f32.mrb[1].mxu1 }
 0x1b3   : > { %v2189_v41 = vmul.f32 -1.442695, %v801_v40  ;;  %v803_v42 = vpop.f32.mrb[2].mxu1 }
 0x1b4   : > { %2659 = vpow2.f32 %v2188_v39  ;;  %v2192_v43 = vmul.f32 -1.442695, %v803_v42  ;;  %v805_v44 = vpop.f32.mrb[3].mxu1  ;;  %v2655_v39 = vld [vmem:[%s3168_s30 + $0x1e4] ss:$8 sps:$4 sm:$0xff]  }
 0x1b5   : > { %2661 = vpow2.f32 %v2189_v41  ;;  %v2193_v45 = vmul.f32 -1.442695, %v805_v44  ;;  %v2658_v41 = vld [vmem:[%s3168_s30 + $0x1f4] ss:$8 sps:$4 sm:$0xff]  }
 0x1b6   : > { %2663 = vpow2.f32 %v2192_v43  ;;  %v1269_v46 = vpop.f32.mrb[0].mxu0 }
 0x1b7   : > { %2665 = vpow2.f32 %v2193_v45  ;;  %v1271_v47 = vpop.f32.mrb[1].mxu0 }
 0x1b8   : > { %v1273_v49 = vpop.f32.mrb[2].mxu0 }
 0x1b9   : > { %v1275_v51 = vpop.f32.mrb[3].mxu0 }
 0x1be   : > { %v2660_v48 = vpop.eup %2659 }
 0x1bf   : > { %v2662_v50 = vpop.eup %2661  ;;  %v1345_v62 = vadd.f32 1.0, %v2660_v48 }
 0x1c0   : > { %v2664_v52 = vpop.eup %2663  ;;  %v1346_v53 = vadd.f32 1.0, %v2662_v50 }
 0x1c1   : > { %v2666_v54 = vpop.eup %2665  ;;  %2667 = vrcp.f32 %v1345_v62  ;;  %v1349_v55 = vadd.f32 1.0, %v2664_v52 }
 0x1c2   : > { %2669 = vrcp.f32 %v1346_v53  ;;  %v1350_v56 = vadd.f32 1.0, %v2666_v54 }
 0x1c3   : > { %2671 = vrcp.f32 %v1349_v55 }
 0x1c4   : > { %2673 = vrcp.f32 %v1350_v56 }
 0x1cb   : > { %v2668_v57 = vpop.eup %2667 }
 0x1cc   : > { %v2670_v58 = vpop.eup %2669  ;;  %v1369_v59 = vmul.f32 %v2668_v57, %v799_v38  ;;  %v2650_v38 = vld [vmem:[%s3168_s30 + $0x1d0] ss:$8 sps:$4 sm:$0xff]  }
 0x1cd   : > { %v2672_v34 = vpop.eup %2671  ;;  %v1370_v60 = vmul.f32 %v2670_v58, %v801_v40  ;;  %v2653_v40 = vld [vmem:[%s3168_s30 + $0x1e0] ss:$8 sps:$4 sm:$0xff]  }
 0x1ce   : > { %v2674_v61 = vpop.eup %2673  ;;  %v1373_v63 = vmul.f32 %v2672_v34, %v803_v42  ;;  %v1377_v0 = vmul.f32 %v1369_v59, %v1269_v46 }
 0x1cf   : > { %v1374_v1 = vmul.f32 %v2674_v61, %v805_v44  ;;  %v1378_v2 = vmul.f32 %v1370_v60, %v1271_v47  ;;  %v2656_v44 = vld [vmem:[%s3168_s30 + $0x1f0] ss:$8 sps:$4 sm:$0xff]  }
 0x1d0   : > { %v1381_v3 = vmul.f32 %v1373_v63, %v1273_v49 }
 0x1d1   : > { %v1382_v4 = vmul.f32 %v1374_v1, %v1275_v51 }
 0x1d2   : > { %v1389_v5 = vpack.c.bf16 %v1381_v3, %v1377_v0 }
 0x1d3   : > { %v1390_v6 = vpack.c.bf16 %v1382_v4, %v1378_v2 }
 0x1d5   : > { %1809 = vmatprep.mubr.bf16.mxu0 %v1390_v6 }
 0x1d6   : > { %1810 = vmatmul.mubr.bf16.vlgmr.msra.gmra.mrb[4].mxu0 %v1389_v5 }
 0x1d7   : > { %1821 = vmatpush1.bf16.msra.mxu0 %v2611_v7 }
 0x1d8   : > { %1822 = vmatprep.subr.bf16.mxu0 %v2616_v8  ;;  %v1385_v8 = vld [vmem:[#allocation2] sm:$0xff] }
 0x1db   : > { %1823 = vmatpush1.bf16.msra.mxu0 %v2614_v9  ;;  %v1386_v9 = vld [vmem:[#allocation2 + $0x8] sm:$0xff] }
 0x1dc   : > { %1824 = vmatprep.subr.bf16.mxu0 %v2619_v10 }
 0x1df   : > { %1825 = vmatpush1.bf16.msra.mxu0 %v2617_v11  ;;  %v1387_v11 = vld [vmem:[#allocation2 + $0x10] sm:$0xff] }
 0x1e0   : > { %1826 = vmatprep.subr.bf16.mxu0 %v2622_v12 }
 0x1e3   : > { %1827 = vmatpush1.bf16.msra.mxu0 %v2620_v13 }
 0x1e4   : > { %1828 = vmatprep.subr.bf16.mxu0 %v2625_v14  ;;  %v1388_v14 = vld [vmem:[#allocation2 + $0x18] sm:$0xff] }
 0x1e7   : > { %1829 = vmatpush1.bf16.msra.mxu0 %v2623_v15 }
 0x1e8   : > { %1830 = vmatprep.subr.bf16.mxu0 %v2628_v16 }
 0x1eb   : > { %1831 = vmatpush1.bf16.msra.mxu0 %v2626_v17 }
 0x1ec   : > { %1832 = vmatprep.subr.bf16.mxu0 %v2631_v18 }
 0x1ef   : > { %1833 = vmatpush1.bf16.msra.mxu0 %v2629_v19 }
 0x1f0   : > { %1834 = vmatprep.subr.bf16.mxu0 %v2634_v20 }
 0x1f1   : > { %v842_v23 = vpop.f32.mrb[4].mxu1 }
 0x1f2   : > { %v844_v24 = vpop.f32.mrb[5].mxu1  ;;  %v2190_v42 = vmul.f32 -1.442695, %v842_v23 }
 0x1f3   : > { %v846_v25 = vpop.f32.mrb[6].mxu1  ;;  %1835 = vmatpush1.bf16.msra.mxu0 %v2632_v21  ;;  %v2191_v43 = vmul.f32 -1.442695, %v844_v24 }
 0x1f4   : > { %v848_v27 = vpop.f32.mrb[7].mxu1  ;;  %1836 = vmatprep.subr.bf16.mxu0 %v2637_v22  ;;  %v2194_v45 = vmul.f32 -1.442695, %v846_v25  ;;  %2675 = vpow2.f32 %v2190_v42 }
 0x1f5   : > { %v2195_v46 = vmul.f32 -1.442695, %v848_v27  ;;  %2677 = vpow2.f32 %v2191_v43 }
 0x1f6   : > { %2679 = vpow2.f32 %v2194_v45 }
 0x1f7   : > { %1837 = vmatpush1.bf16.msra.mxu0 %v2635_v26  ;;  %2681 = vpow2.f32 %v2195_v46 }
 0x1f8   : > { %1838 = vmatprep.subr.bf16.mxu0 %v2640_v28 }
 0x1fb   : > { %1839 = vmatpush1.bf16.msra.mxu0 %v2638_v29 }
 0x1fc   : > { %1840 = vmatprep.subr.bf16.mxu0 %v2643_v30 }
 0x1fe   : > { %v2676_v47 = vpop.eup %2675 }
 0x1ff   : > { %1841 = vmatpush1.bf16.msra.mxu0 %v2641_v31  ;;  %v2678_v48 = vpop.eup %2677  ;;  %v1347_v62 = vadd.f32 1.0, %v2676_v47 }
 0x200   : > { %1842 = vmatprep.subr.bf16.mxu0 %v2646_v32  ;;  %v2680_v49 = vpop.eup %2679  ;;  %v1348_v51 = vadd.f32 1.0, %v2678_v48 }
 0x201   : > { %v2682_v50 = vpop.eup %2681  ;;  %v1351_v52 = vadd.f32 1.0, %v2680_v49  ;;  %2683 = vrcp.f32 %v1347_v62 }
 0x202   : > { %v1352_v53 = vadd.f32 1.0, %v2682_v50  ;;  %2685 = vrcp.f32 %v1348_v51 }
 0x203   : > { %1843 = vmatpush1.bf16.msra.mxu0 %v2644_v33  ;;  %2687 = vrcp.f32 %v1351_v52 }
 0x204   : > { %1844 = vmatprep.subr.bf16.mxu0 %v2649_v35  ;;  %2689 = vrcp.f32 %v1352_v53 }
 0x207   : > { %1845 = vmatpush1.bf16.msra.mxu0 %v2647_v36 }
 0x208   : > { %1846 = vmatprep.subr.bf16.mxu0 %v2652_v37 }
 0x20b   : > { %1847 = vmatpush1.bf16.msra.mxu0 %v2650_v38  ;;  %v2684_v54 = vpop.eup %2683 }
 0x20c   : > { %1848 = vmatprep.subr.bf16.mxu0 %v2655_v39  ;;  %v2686_v55 = vpop.eup %2685  ;;  %v1371_v58 = vmul.f32 %v2684_v54, %v842_v23 }
 0x20d   : > { %v2688_v56 = vpop.eup %2687  ;;  %v1372_v59 = vmul.f32 %v2686_v55, %v844_v24 }
 0x20e   : > { %v2690_v57 = vpop.eup %2689  ;;  %v1375_v60 = vmul.f32 %v2688_v56, %v846_v25 }
 0x20f   : > { %1849 = vmatpush1.bf16.msra.mxu0 %v2653_v40  ;;  %v1376_v0 = vmul.f32 %v2690_v57, %v848_v27 }
 0x210   : > { %1850 = vmatprep.subr.bf16.mxu0 %v2658_v41 }
 0x213   : > { %1851 = vmatpush1.bf16.msra.mxu0 %v2656_v44 }
 0x231   : > { %v1312_v34 = vpop.f32.mrb[8].mxu1 }
 0x232   : > { %v1379_v61 = vmul.f32 %v1371_v58, %v1312_v34  ;;  %v1314_v63 = vpop.f32.mrb[9].mxu1 }
 0x233   : > { %v1380_v1 = vmul.f32 %v1372_v59, %v1314_v63  ;;  %v1316_v2 = vpop.f32.mrb[10].mxu1 }
 0x234   : > { %v1383_v3 = vmul.f32 %v1375_v60, %v1316_v2  ;;  %v1318_v4 = vpop.f32.mrb[11].mxu1 }
 0x235   : > { %v1384_v5 = vmul.f32 %v1376_v0, %v1318_v4 }
 0x236   : > { %v1391_v6 = vpack.c.bf16 %v1383_v3, %v1379_v61 }
 0x237   : > { %v1392_v7 = vpack.c.bf16 %v1384_v5, %v1380_v1 }
 0x239   : > { %1852 = vmatprep.mubr.bf16.mxu0 %v1392_v7 }
 0x23a   : > { %1853 = vmatmul.mubr.bf16.vlgmr.msra.gmra.mrb[4].mxu0 %v1391_v6 }
 0x30d   : > { %v1854_v10 = vpop.f32.mrb[4].mxu0  ;;  %1874 = sbr.rel (%p2260_p1) target bundleno = 798 (0x31e), region = 60 }
 0x30e   : > { %v1863_v12 = vadd.f32 %v1854_v10, %v1385_v8  ;;  %v1856_v13 = vpop.f32.mrb[5].mxu0 }
 0x30f   : > { %v1864_v15 = vadd.f32 %v1856_v13, %v1386_v9  ;;  %v1858_v16 = vpop.f32.mrb[6].mxu0 }
 0x310   : > { %1867 = vst [vmem:[#allocation2] sm:$0xff] %v1863_v12  ;;  %v1865_v17 = vadd.f32 %v1858_v16, %v1387_v11  ;;  %v1860_v18 = vpop.f32.mrb[7].mxu0 }
 0x311   : > { %1868 = vst [vmem:[#allocation2 + $0x8] sm:$0xff] %v1864_v15  ;;  %v1866_v19 = vadd.f32 %v1860_v18, %v1388_v14 }
 0x312   : > { %1869 = vst [vmem:[#allocation2 + $0x10] sm:$0xff] %v1865_v17 }
 0x313   : > { %1870 = vst [vmem:[#allocation2 + $0x18] sm:$0xff] %v1866_v19 }
 0x317   : > { %v1875_v20 = vld [vmem:[#allocation2] sm:$0xff] }
 0x318   : > { %v1876_v21 = vld [vmem:[#allocation2 + $0x8] sm:$0xff] }
 0x319   : > { %v1877_v22 = vld [vmem:[#allocation2 + $0x10] sm:$0xff]  ;;  %v2271_v23 = vpack.c.bf16 %v1876_v21, %v1875_v20 }
 0x31a   : > { %v1878_v24 = vld [vmem:[#allocation2 + $0x18] sm:$0xff] }
 0x31b   : > { %v2272_v25 = vpack.c.bf16 %v1878_v24, %v1877_v22  ;;  %1891 = vst [vmem:[#allocation11] sm:$0xff] %v2271_v23 }
 0x31d   : > { %1892 = vst [vmem:[#allocation11 + $0x8] sm:$0xff] %v2272_v25 }
 0x31e PF: > { %p2308_p4 = scmp.eq.s32.totalorder %s3042_s24, 3  ;;  %s2909_s29 = smov [#allocation11]  }
 0x31f   : > { %s1905_s25 = sshll.u32 %s2909_s29, 4  ;;  %s1906_s25 = int_to_ptr.vmem [resolvable:$true] %s1905_s25 }
 0x320   : > { %s2809_s9 = scalar_lea.vmem %s1906_s25, 256  ;;  %p2816_p7 = scmp.lt.s32.totalorder %s1906_s25, %s1906_s25 }
 0x321   : > { %p2810_p2 = scmp.ne.s32.totalorder %s1906_s25, %s2809_s9  ;;  %p2817_p9 = scmp.lt.s32.totalorder %s2809_s9, %s2809_s9 }
 0x323   : > { %p2811_p8 = pnand %p2810_p2, %p2308_p4  ;;  %p2818_p12 = por %p2817_p9, %p2816_p7 }
 0x325   : > { %p2812_p3 = pneg %p2811_p8 }
 0x327   : > { %p2819_p10 = pnand %p2818_p12, %p2812_p3 }
 0x329   : > { %2822 = shalt.err (!%p2819_p10)
}
 0x32a   : > { %s2823_s7 = scalar_lea.hbm %s3425_s4, 256 }
 0x32b   : > { %p2824_p6 = scmp.ne.s32.totalorder %s3425_s4, %s2823_s7  ;;  %p2829_p0 = scmp.lt.u32.totalorder %s2823_s7, %s3425_s4 }
 0x32d   : > { %p2825_p11 = pnand %p2824_p6, %p2308_p4 }
 0x32f   : > { %p2826_p5 = pneg %p2825_p11 }
 0x331   : > { %p2831_p13 = pnand %p2829_p0, %p2826_p5 }
 0x333   : > { %2834 = shalt.err (!%p2831_p13)
}
 0x334   : > { %s2910_s26 = smov 128   ;;  %s2911_s12 = smov 8  }
 0x335   : > { %2288 = dma.vmem_to_hbm [thread:$0]  (%p2308_p4), %s1906_s25, 256, %s3425_s4, [#allocation5], %s2910_s26, %s2910_s26, %s2911_s12  }
 0x336   : > { %2872 = dma.done.wait (%p2308_p4), [#allocation5], 256  }
 0x337   : > { %2874 = vsyncadd (%p2308_p4), [#allocation5], 4294967040 }
 0x338 PF: > { %s22_s20 = sadd.s32 1, %s2897_s20   ;;  %s3460_s11 = sld [smem:[#allocation16_spill]] }
 0x339   : > { %p19_p1 = scmp.ge.s32.totalorder %s22_s20, 6   ;;  %s3461_s15 = smov %s2881_s16 }
 0x33a   : > { %s3462_s16 = smov %s2885_s17  ;;  %s3463_s17 = smov %s2981_s27 }
 0x33b   : > { %s3464_s18 = smov %s2893_s19  ;;  %21 = sbr.rel (!%p19_p1) target bundleno = 10 (0xa), region = 112 }
 0x33e   : > { %s3465_s19 = smov %s3460_s11 }
 0x342   :  { %1921 = vsyncpa [#allocation4], 1 }
 0x343   :  { %1923 = vsyncpa [#allocation4 + $0x1], 1 }
 0x344   :  { %1924 = vsyncpa [#allocation7], 1 }
 0x345   :  { %1926 = vsyncpa [#allocation7 + $0x1], 1 }
 0x346   :  { %1927 = vsyncpa [#allocation10], 1 }
 0x347   :  { %1929 = vsyncpa [#allocation10 + $0x1], 1 }
 0x348   :  { %1930 = vsyncpa [#allocation5], 1 }
 0x349   :  { %1932 = vsyncpa [#allocation5 + $0x1], 1 }

</bundles_post_ra>
